<compile_context>
chip_gen: v7x
topology: tpu7x:2x2x1
jax: 0.10.0
libtpu: 0.0.40
codegen_flags: <defaults>
</compile_context>

<pallas_src>
import functools

import jax
import jax.numpy as jnp
from jax.experimental import pallas as pl
from jax.experimental.pallas import tpu as pltpu

LANE = 128      # vreg lane width
SUBLANE = 8     # f32 sublane height


def _round_up(n, m):
    return pl.cdiv(n, m) * m


def dnn_kernel(x_ref, w1_ref, b1_ref, w2_ref, b2_ref, o_ref, *, out_dim):
    """One (tile_b, *) batch tile; weights/biases are VMEM-resident blocks."""
    # Layer 1: cast x to bf16 in-register (VPU filler), MXU matmul, f32 acc,
    # f32 bias + ReLU on the VPU. K = in_dim is unpadded (Mosaic masks/pads).
    x = x_ref[...].astype(w1_ref.dtype)
    h = jnp.dot(x, w1_ref[...], preferred_element_type=jnp.float32)
    h = jnp.maximum(h + b1_ref[...], 0.0)

    # Layer 2: bf16 matmul against the lane-padded (hid_p, out_p) weight,
    # f32 accumulation + bias.
    y = jnp.dot(h.astype(w2_ref.dtype), w2_ref[...],
                preferred_element_type=jnp.float32)
    y = y + b2_ref[...]

    # Keep only the real output columns, then exact sigmoid (exp on EUP,
    # divide on VPU — nowhere near the bottleneck). Narrow masked store.
    y = y[:, :out_dim]
    o_ref[...] = (1.0 / (1.0 + jnp.exp(-y))).astype(o_ref.dtype)


def prepare_params(w1, b1, w2, b2, compute_dtype=jnp.bfloat16):
    """Pad/cast the weights ONCE (reused across forward calls).

    w1: (in, hid); b1: (1, hid); w2: (hid, out); b2: (1, out).
    Only the lane (last) dims are zero-padded to 128 — exact numerics.
    """
    in_dim, hid_dim = w1.shape
    out_dim = w2.shape[1]
    hid_p = _round_up(hid_dim, LANE)
    out_p = _round_up(out_dim, LANE)

    w1p = jnp.zeros((in_dim, hid_p), compute_dtype).at[:, :hid_dim].set(
        w1.astype(compute_dtype))
    b1p = jnp.zeros((1, hid_p), jnp.float32).at[:, :hid_dim].set(
        b1.astype(jnp.float32))
    w2p = jnp.zeros((hid_p, out_p), compute_dtype).at[:hid_dim, :out_dim].set(
        w2.astype(compute_dtype))
    b2p = jnp.zeros((1, out_p), jnp.float32).at[:, :out_dim].set(
        b2.astype(jnp.float32))
    return w1p, b1p, w2p, b2p


def _choose_tile_b(B, tile_b):
    """Multiple of 8, capped near B/4 so the grid has >= ~4 steps (v7x TCs)
    and the last-tile batch-padding waste stays bounded."""
    b8 = _round_up(B, SUBLANE)
    t = min(tile_b, b8)
    t = min(t, _round_up(pl.cdiv(b8, 4), SUBLANE))
    t = max(SUBLANE, _round_up(t, SUBLANE))
    return t, b8


def _vmem_limit_bytes(tile_b, in_dim, hid_p, out_p):
    """Scoped-VMEM request derived from the actual (lane-padded) buffers."""
    x_blk = tile_b * _round_up(in_dim, LANE) * 4          # f32 input tile
    o_blk = tile_b * out_p * 4                            # f32 output tile
    w_res = (_round_up(in_dim, SUBLANE) * hid_p + hid_p * out_p) * 2  # bf16
    b_res = SUBLANE * (hid_p + out_p) * 4                 # f32 biases
    need = 2 * (x_blk + o_blk + w_res + b_res) + (4 << 20)
    return int(min(64 << 20, max(32 << 20, need)))        # 64 MiB cap: v7x-safe


def dnn_forward(x, w1p, b1p, w2p, b2p, *, out_dim, tile_b=1024):
    """x: (B, in_dim) f32; prepared params from `prepare_params`.

    Returns (B, out_dim) f32 = sigmoid(relu(x @ w1 + b1) @ w2 + b2).
    """
    B, in_dim = x.shape
    hid_p = w1p.shape[1]
    out_p = w2p.shape[1]
    assert w1p.shape[0] == in_dim

    tile_b, b8 = _choose_tile_b(B, tile_b)
    b_p = _round_up(b8, tile_b)

    # Minimal batch padding only (feature dims are NOT padded on x / output).
    if b_p != B:
        x_in = jnp.zeros((b_p, in_dim), x.dtype).at[:B, :].set(x)
    else:
        x_in = x

    grid = (b_p // tile_b,)

    out = pl.pallas_call(
        functools.partial(dnn_kernel, out_dim=out_dim),
        out_shape=jax.ShapeDtypeStruct((b_p, out_dim), jnp.float32),
        grid=grid,
        in_specs=[
            # x: natural width, tiled over batch, double-buffered.
            pl.BlockSpec((tile_b, in_dim), lambda i: (i, 0)),
            # weights / biases: constant index_map -> VMEM-resident, DMA'd once.
            pl.BlockSpec((in_dim, hid_p), lambda i: (0, 0)),
            pl.BlockSpec((1, hid_p), lambda i: (0, 0)),
            pl.BlockSpec((hid_p, out_p), lambda i: (0, 0)),
            pl.BlockSpec((1, out_p), lambda i: (0, 0)),
        ],
        # Narrow output: only the real columns are ever written to HBM.
        out_specs=pl.BlockSpec((tile_b, out_dim), lambda i: (i, 0)),
        compiler_params=pltpu.CompilerParams(
            dimension_semantics=("parallel",),  # batch shards across TCs on v7x
            vmem_limit_bytes=_vmem_limit_bytes(tile_b, in_dim, hid_p, out_p),
        ),
    )(x_in, w1p, b1p, w2p, b2p)

    return out[:B] if b_p != B else out


def init_params(key, input_dim, hidden_dim, output_dim):
    """Deterministic init mimicking nn.Linear (uniform +/- 1/sqrt(fan_in))."""
    k1, k2, k3, k4 = jax.random.split(key, 4)
    lim1 = 1.0 / jnp.sqrt(jnp.float32(input_dim))
    lim2 = 1.0 / jnp.sqrt(jnp.float32(hidden_dim))
    # Stored already transposed: (in, out)
    w1 = jax.random.uniform(k1, (input_dim, hidden_dim), jnp.float32, -lim1, lim1)
    b1 = jax.random.uniform(k2, (1, hidden_dim), jnp.float32, -lim1, lim1)
    w2 = jax.random.uniform(k3, (hidden_dim, output_dim), jnp.float32, -lim2, lim2)
    b2 = jax.random.uniform(k4, (1, output_dim), jnp.float32, -lim2, lim2)
    return w1, b1, w2, b2


def ref_forward(x, w1, b1, w2, b2, compute_dtype=jnp.bfloat16):
    """Pure-JAX reference mirroring the kernel's bf16-matmul / f32-accumulate path."""
    h = jnp.dot(x.astype(compute_dtype), w1.astype(compute_dtype),
                preferred_element_type=jnp.float32) + b1
    h = jnp.maximum(h, 0.0)
    y = jnp.dot(h.astype(compute_dtype), w2.astype(compute_dtype),
                preferred_element_type=jnp.float32) + b2
    return jax.nn.sigmoid(y)


if __name__ == "__main__":
    # Shapes implied by the PyTorch module defaults: input_dim=10, hidden_dim=10,
    # output_dim=1 (note: num_hidden_layer is unused by the module's forward).
    input_dim, hidden_dim, output_dim = 10, 10, 1
    batch = 8

    key = jax.random.PRNGKey(0)
    kx, kp = jax.random.split(key)

    # input_info = {'input': x} in the PyTorch module; we just take the array.
    x = jax.random.normal(kx, (batch, input_dim), dtype=jnp.float32)
    w1, b1, w2, b2 = init_params(kp, input_dim, hidden_dim, output_dim)

    # One-time weight preparation (pad/cast), reused across forward calls.
    w1p, b1p, w2p, b2p = prepare_params(w1, b1, w2, b2)

    fwd = jax.jit(functools.partial(dnn_forward, out_dim=output_dim))
    out = jax.block_until_ready(fwd(x, w1p, b1p, w2p, b2p))

    ref = ref_forward(x, w1, b1, w2, b2)
    assert out.shape == (batch, output_dim)
    # Tolerance covers bf16 matmul rounding / accumulation-order noise.
    assert jnp.allclose(out, ref, atol=2e-3, rtol=0.0), (
        f"max abs err = {jnp.max(jnp.abs(out - ref))}")

    print("KERNEL_OK")
</pallas_src>

<mosaic_0001>
module attributes {stable_mosaic.version = 11 : i64} {
  func.func @dnn_kernel(%arg0: i32, %arg1: memref<8x10xf32, #tpu.memory_space<vmem>>, %arg2: memref<10x128xbf16, #tpu.memory_space<vmem>>, %arg3: memref<1x128xf32, #tpu.memory_space<vmem>>, %arg4: memref<128x128xbf16, #tpu.memory_space<vmem>>, %arg5: memref<1x128xf32, #tpu.memory_space<vmem>>, %arg6: memref<8x1xf32, #tpu.memory_space<vmem>>) attributes {dimension_semantics = [#tpu.dimension_semantics<parallel>], iteration_bounds = array<i64: 1>, scalar_prefetch = 0 : i64, scratch_operands = 0 : i64, tpu.core_type = #tpu.core_type<tc>, window_params = [{transform_indices = @transform_0, window_bounds = array<i64: 8, 10>}, {pipeline_mode = #tpu.pipeline_mode<synchronous>, transform_indices = @transform_1, window_bounds = array<i64: 10, 128>}, {pipeline_mode = #tpu.pipeline_mode<synchronous>, transform_indices = @transform_2, window_bounds = array<i64: 1, 128>}, {pipeline_mode = #tpu.pipeline_mode<synchronous>, transform_indices = @transform_3, window_bounds = array<i64: 128, 128>}, {pipeline_mode = #tpu.pipeline_mode<synchronous>, transform_indices = @transform_4, window_bounds = array<i64: 1, 128>}, {transform_indices = @transform_5, window_bounds = array<i64: 8, 1>}]} {
    %c0 = arith.constant 0 : index
    %c0_0 = arith.constant 0 : index
    %0 = vector.load %arg1[%c0, %c0_0] : memref<8x10xf32, #tpu.memory_space<vmem>>, vector<8x10xf32>
    %1 = arith.truncf %0 : vector<8x10xf32> to vector<8x10xbf16>
    %c0_1 = arith.constant 0 : index
    %c0_2 = arith.constant 0 : index
    %2 = vector.load %arg2[%c0_1, %c0_2] : memref<10x128xbf16, #tpu.memory_space<vmem>>, vector<10x128xbf16>
    %cst = arith.constant dense<0.000000e+00> : vector<8x128xf32>
    %3 = tpu.matmul %1, %2, %cst {dimension_numbers = #tpu.dot_dimension_numbers<[1], [0], [0], [1], [0, 0, 1, 1], [], []>} : vector<8x10xbf16>, vector<10x128xbf16>, vector<8x128xf32> -> vector<8x128xf32>
    %c0_3 = arith.constant 0 : index
    %c0_4 = arith.constant 0 : index
    %4 = vector.load %arg3[%c0_3, %c0_4] : memref<1x128xf32, #tpu.memory_space<vmem>>, vector<1x128xf32>
    %5 = vector.broadcast %4 : vector<1x128xf32> to vector<8x128xf32>
    %6 = arith.addf %3, %5 : vector<8x128xf32>
    %cst_5 = arith.constant 0.000000e+00 : f32
    %7 = vector.broadcast %cst_5 : f32 to vector<8x128xf32>
    %8 = arith.maximumf %6, %7 : vector<8x128xf32>
    %9 = arith.truncf %8 : vector<8x128xf32> to vector<8x128xbf16>
    %c0_6 = arith.constant 0 : index
    %c0_7 = arith.constant 0 : index
    %10 = vector.load %arg4[%c0_6, %c0_7] : memref<128x128xbf16, #tpu.memory_space<vmem>>, vector<128x128xbf16>
    %cst_8 = arith.constant dense<0.000000e+00> : vector<8x128xf32>
    %11 = tpu.matmul %9, %10, %cst_8 {dimension_numbers = #tpu.dot_dimension_numbers<[1], [0], [0], [1], [0, 0, 1, 1], [], []>} : vector<8x128xbf16>, vector<128x128xbf16>, vector<8x128xf32> -> vector<8x128xf32>
    %c0_9 = arith.constant 0 : index
    %c0_10 = arith.constant 0 : index
    %12 = vector.load %arg5[%c0_9, %c0_10] : memref<1x128xf32, #tpu.memory_space<vmem>>, vector<1x128xf32>
    %13 = vector.broadcast %12 : vector<1x128xf32> to vector<8x128xf32>
    %14 = arith.addf %11, %13 : vector<8x128xf32>
    %15 = vector.extract_strided_slice %14 {offsets = [0, 0], sizes = [8, 1], strides = [1, 1]} : vector<8x128xf32> to vector<8x1xf32>
    %cst_11 = arith.constant 0.000000e+00 : f32
    %16 = vector.broadcast %cst_11 : f32 to vector<8x1xf32>
    %17 = arith.subf %16, %15 : vector<8x1xf32>
    %18 = math.exp %17 : vector<8x1xf32>
    %cst_12 = arith.constant 1.000000e+00 : f32
    %19 = vector.broadcast %cst_12 : f32 to vector<8x1xf32>
    %20 = arith.addf %19, %18 : vector<8x1xf32>
    %cst_13 = arith.constant 1.000000e+00 : f32
    %21 = vector.broadcast %cst_13 : f32 to vector<8x1xf32>
    %22 = arith.divf %21, %20 : vector<8x1xf32>
    %c0_14 = arith.constant 0 : index
    %c0_15 = arith.constant 0 : index
    %23 = vector.load %arg6[%c0_14, %c0_15] : memref<8x1xf32, #tpu.memory_space<vmem>>, vector<8x1xf32>
    tpu.vector_store %arg6[%c0_14, %c0_15], %22 {strides = array<i32>} : memref<8x1xf32, #tpu.memory_space<vmem>>, vector<8x1xf32>,
    return
  }
  func.func @transform_0(%arg0: i32) -> (i32, i32) {
    %c0_i32 = arith.constant 0 : i32
    %c0_i32_0 = arith.constant 0 : i32
    return %arg0, %c0_i32 : i32, i32
  }
  func.func @transform_1(%arg0: i32) -> (i32, i32) {
    %c0_i32 = arith.constant 0 : i32
    %c0_i32_0 = arith.constant 0 : i32
    %c0_i32_1 = arith.constant 0 : i32
    return %c0_i32, %c0_i32_0 : i32, i32
  }
  func.func @transform_2(%arg0: i32) -> (i32, i32) {
    %c0_i32 = arith.constant 0 : i32
    %c0_i32_0 = arith.constant 0 : i32
    %c0_i32_1 = arith.constant 0 : i32
    return %c0_i32, %c0_i32_0 : i32, i32
  }
  func.func @transform_3(%arg0: i32) -> (i32, i32) {
    %c0_i32 = arith.constant 0 : i32
    %c0_i32_0 = arith.constant 0 : i32
    %c0_i32_1 = arith.constant 0 : i32
    return %c0_i32, %c0_i32_0 : i32, i32
  }
  func.func @transform_4(%arg0: i32) -> (i32, i32) {
    %c0_i32 = arith.constant 0 : i32
    %c0_i32_0 = arith.constant 0 : i32
    %c0_i32_1 = arith.constant 0 : i32
    return %c0_i32, %c0_i32_0 : i32, i32
  }
  func.func @transform_5(%arg0: i32) -> (i32, i32) {
    %c0_i32 = arith.constant 0 : i32
    %c0_i32_0 = arith.constant 0 : i32
    return %arg0, %c0_i32 : i32, i32
  }
}

</mosaic_0001>

<bundles_post_ra>
// kernel: dnn_forward.1
= control target key start
LH: loop header
LB: loop body
LE: loop exit
PB: predicated region body
PF: predicated region fallthrough
CT: control target
= control target key end

     0   :  { %10 = vsyncpa [#allocation3], 0  ;;  %s478_s0 = inlined_call_operand.hbm [shape: f32[8,10], index: 0, kind: input, shape index: {}]   ;;  %s479_s1 = inlined_call_operand.hbm [shape: bf16[10,128], index: 1, kind: input, shape index: {}]   ;;  %s480_s2 = inlined_call_operand.vmem [shape: f32[1,128], index: 2, kind: input, shape index: {}]   ;;  %s481_s3 = inlined_call_operand.hbm [shape: bf16[128,128], index: 3, kind: input, shape index: {}]   ;;  %s482_s4 = inlined_call_operand.vmem [shape: f32[1,128], index: 4, kind: input, shape index: {}]   ;;  %s483_s5 = inlined_call_operand.vmem [shape: f32[8,1], index: 5, kind: output, shape index: {}]  }
   0x1   :  { %11 = vsyncpa [#allocation5], 0  ;;  %s390_s18 = smov [#allocation4]   ;;  %s320_s22 = scalar_lea.hbm %s479_s1, 128 }
   0x2   :  { %s27_s19 = sshll.u32 %s390_s18, 4  ;;  %p321_p0 = scmp.ne.s32.totalorder %s479_s1, %s320_s22  ;;  %s28_s19 = int_to_ptr.vmem [resolvable:$true] %s27_s19 }
   0x3   :  { %p324_p1 = scmp.lt.u32.totalorder %s320_s22, %s479_s1 }
   0x5   :  { %p326_p2 = pnand %p324_p1, %p321_p0 }
   0x7   :  { %329 = shalt.err (!%p326_p2)
}
   0x8   :  { %s330_s27 = scalar_lea.vmem %s28_s19, 128  ;;  %p335_p4 = scmp.lt.s32.totalorder %s28_s19, %s28_s19 }
   0x9   :  { %p331_p3 = scmp.ne.s32.totalorder %s28_s19, %s330_s27  ;;  %p336_p5 = scmp.lt.s32.totalorder %s330_s27, %s330_s27 }
   0xb   :  { %p337_p6 = por %p336_p5, %p335_p4 }
   0xd   :  { %p338_p7 = pnand %p337_p6, %p331_p3 }
   0xf   :  { %341 = shalt.err (!%p338_p7)
}
  0x10   :  { %s391_s28 = smov 64   ;;  %s392_s29 = smov 4  }
  0x11   :  { %33 = dma.hbm_to_vmem [thread:$0]  %s479_s1, 128, %s28_s19, [#allocation5], %s391_s28, %s391_s28, %s392_s29  }
  0x12   :  { %s393_s7 = smov [#allocation2]   ;;  %s394_s9 = smov [#allocation6]  }
  0x13   :  { %s18_s8 = sshll.u32 %s393_s7, 4  ;;  %s41_s10 = sshll.u32 %s394_s9, 4  ;;  %s19_s8 = int_to_ptr.vmem [resolvable:$true] %s18_s8  ;;  %s42_s10 = int_to_ptr.vmem [resolvable:$true] %s41_s10 }
  0x14   :  { %s342_s13 = scalar_lea.hbm %s478_s0, 128 }
  0x15   :  { %p343_p8 = scmp.ne.s32.totalorder %s478_s0, %s342_s13  ;;  %p346_p9 = scmp.lt.u32.totalorder %s342_s13, %s478_s0 }
  0x17   :  { %p348_p10 = pnand %p346_p9, %p343_p8 }
  0x19   :  { %351 = shalt.err (!%p348_p10)
}
  0x1a   :  { %s352_s1 = scalar_lea.vmem %s19_s8, 128  ;;  %p357_p12 = scmp.lt.s32.totalorder %s19_s8, %s19_s8 }
  0x1b   :  { %p353_p11 = scmp.ne.s32.totalorder %s19_s8, %s352_s1  ;;  %p358_p13 = scmp.lt.s32.totalorder %s352_s1, %s352_s1 }
  0x1d   :  { %p359_p0 = por %p358_p13, %p357_p12 }
  0x1f   :  { %p360_p1 = pnand %p359_p0, %p353_p11 }
  0x21   :  { %363 = shalt.err (!%p360_p1)
}
  0x22   :  { %21 = dma.hbm_to_vmem [thread:$0]  %s478_s0, 128, %s19_s8, [#allocation3]  }
  0x23   :  { %s364_s22 = scalar_lea.hbm %s481_s3, 1024 }
  0x24   :  { %p365_p2 = scmp.ne.s32.totalorder %s481_s3, %s364_s22  ;;  %p368_p3 = scmp.lt.u32.totalorder %s364_s22, %s481_s3 }
  0x26   :  { %p370_p4 = pnand %p368_p3, %p365_p2 }
  0x28   :  { %373 = shalt.err (!%p370_p4)
}
  0x29   :  { %s374_s27 = scalar_lea.vmem %s42_s10, 1024  ;;  %p379_p6 = scmp.lt.s32.totalorder %s42_s10, %s42_s10 }
  0x2a   :  { %p375_p5 = scmp.ne.s32.totalorder %s42_s10, %s374_s27  ;;  %p380_p7 = scmp.lt.s32.totalorder %s374_s27, %s374_s27 }
  0x2c   :  { %p381_p8 = por %p380_p7, %p379_p6 }
  0x2e   :  { %p382_p9 = pnand %p381_p8, %p375_p5 }
  0x30   :  { %385 = shalt.err (!%p382_p9)
}
  0x31   :  { %47 = dma.hbm_to_vmem [thread:$0]  %s481_s3, 1024, %s42_s10, [#allocation5], %s391_s28, %s391_s28, %s392_s29  }
  0x32   :  { %386 = dma.done.wait [#allocation3], 128  }
  0x33   :  { %387 = vsyncadd [#allocation3], 4294967168 }
  0x34   :  { %388 = dma.done.wait [#allocation5], 1152  }
  0x35   :  { %389 = vsyncadd [#allocation5], 4294966144  ;;  %v395_v0 = vmov 0.0   ;;  %vm396_vm0 = vmmov 0   ;;  %vm80_vm1 = vcmask 1044480   ;;  %v60_v2 = vld [vmem:[#allocation2] sm:$0xff] }
  0x36   :  { %274 = vmatprep.subr.bf16.mxu0 %v395_v0  ;;  %276 = vmatprep.mubr.msk.bf16.mxu0 %vm396_vm0, %v395_v0  ;;  %v307_v1 = vld [vmem:[#allocation4] sm:$0x1f]   ;;  %v61_v4 = vpack.c.bf16 %v60_v2, %v60_v2  ;;  %v308_v5 = vld [vmem:[#allocation6] sm:$0xff]   ;;  %vm76_vm2 = vcmask 80896   ;;  %v309_v6 = vld [vmem:[#allocation6 + $0x8] sm:$0xff]   ;;  %vm243_vm3 = vcmask 7168  }
  0x37   :  { %280 = vmatprep.subr.bf16.mxu1 %v395_v0  ;;  %296 = vmatprep.mubr.msk.bf16.mxu1 %vm396_vm0, %v395_v0  ;;  %v82_v3 = vsel %vm80_vm1, %v307_v1, 0  ;;  %v310_v7 = vld [vmem:[#allocation6 + $0x10] sm:$0xff]   ;;  %v311_v8 = vld [vmem:[#allocation6 + $0x18] sm:$0xff]   ;;  %v312_v9 = vld [vmem:[#allocation6 + $0x20] sm:$0xff]  }
  0x38   :  { %275 = vmatpush3.bf16.msra.mxu0 %v82_v3  ;;  %281 = vmatpush3.bf16.msra.mxu1 %v308_v5  ;;  %v313_v10 = vld [vmem:[#allocation6 + $0x28] sm:$0xff]   ;;  %v314_v11 = vld [vmem:[#allocation6 + $0x30] sm:$0xff]   ;;  %v315_v12 = vld [vmem:[#allocation6 + $0x38] sm:$0xff]  }
  0x39   :  { %282 = vmatprep.subr.bf16.mxu1 %v395_v0  ;;  %v251_v13 = vld [vmem:[%s480_s2] ss:$0 sm:$0xff] }
  0x3a   :  { %v254_v21 = vld [vmem:[%s482_s4] ss:$0 sm:$0xff] }
  0x3b   :  { %277 = vmatmul.mubr.msk.bf16.vlgmr.msra.gmra.mrb[0].mxu0 %vm76_vm2, %v61_v4 }
  0x3c   :  { %283 = vmatpush3.bf16.msra.mxu1 %v309_v6 }
  0x3d   :  { %284 = vmatprep.subr.bf16.mxu1 %v395_v0 }
  0x40   :  { %285 = vmatpush3.bf16.msra.mxu1 %v310_v7 }
  0x41   :  { %286 = vmatprep.subr.bf16.mxu1 %v395_v0 }
  0x44   :  { %287 = vmatpush3.bf16.msra.mxu1 %v311_v8 }
  0x45   :  { %288 = vmatprep.subr.bf16.mxu1 %v395_v0 }
  0x48   :  { %289 = vmatpush3.bf16.msra.mxu1 %v312_v9 }
  0x49   :  { %290 = vmatprep.subr.bf16.mxu1 %v395_v0 }
  0x4c   :  { %291 = vmatpush3.bf16.msra.mxu1 %v313_v10 }
  0x4d   :  { %292 = vmatprep.subr.bf16.mxu1 %v395_v0 }
  0x50   :  { %293 = vmatpush3.bf16.msra.mxu1 %v314_v11 }
  0x51   :  { %294 = vmatprep.subr.bf16.mxu1 %v395_v0 }
  0x54   :  { %295 = vmatpush3.bf16.msra.mxu1 %v315_v12 }
 0x10e   :  { %v118_v14 = vpop.f32.mrb[0].mxu0 }
 0x10f   :  { %v119_v15 = vadd.f32 %v251_v13, %v118_v14  ;;  %v278_v16 = vpop.f32.mrb[1].mxu0 }
 0x110   :  { %v121_v17 = vpop.f32.mrb[2].mxu0 }
 0x111   :  { %v124_v18 = vmax.f32 %v119_v15, 0.0  ;;  %v279_v19 = vpop.f32.mrb[3].mxu0 }
 0x113   :  { %v125_v20 = vpack.c.bf16 %v124_v18, %v124_v18 }
 0x115   :  { %297 = vmatmul.mubr.bf16.vlgmr.msra.gmra.mrb[0].mxu1 %v125_v20 }
 0x1e8   :  { %v231_v22 = vpop.f32.mrb[0].mxu1 }
 0x1e9   :  { %v232_v23 = vadd.f32 %v254_v21, %v231_v22  ;;  %v298_v24 = vpop.f32.mrb[1].mxu1 }
 0x1ea   :  { %v234_v25 = vpop.f32.mrb[2].mxu1 }
 0x1eb   :  { %v237_v26 = vsub.f32 0.0, %v232_v23  ;;  %v299_v27 = vpop.f32.mrb[3].mxu1 }
 0x1ed   :  { %v238_v28 = vmul.f32 1.442695, %v237_v26 }
 0x1ef   :  { %316 = vpow2.f32 %v238_v28 }
 0x1f9   :  { %v317_v29 = vpop.eup %316 }
 0x1fa   :  { %v240_v30 = vadd.f32 1.0, %v317_v29 }
 0x1fc   :  { %318 = vrcp.f32 %v240_v30 }
 0x206   :  { %v319_v31 = vpop.eup %318 }
 0x207   :  { %244 = vst.msk [vmem:[%s483_s5] sm:$0xff] %vm243_vm3, %v319_v31 }
 0x208   :  { %249 = vsyncpa [#allocation3], 1 }
 0x209   :  { %250 = vsyncpa [#allocation5], 1 }

</bundles_post_ra>
